<compile_context>
chip_gen: v7x
topology: tpu7x:2x2x1
jax: 0.10.0
libtpu: 0.0.40
codegen_flags: <defaults>
</compile_context>

<pallas_src>
import functools

import jax
import jax.numpy as jnp
from jax.experimental import pallas as pl
from jax.experimental.pallas import tpu as pltpu


def _make_divisible(v, divisor, min_value=None):
    if min_value is None:
        min_value = divisor
    new_v = max(min_value, int(v + divisor / 2) // divisor * divisor)
    if new_v < 0.9 * v:
        new_v += divisor
    return new_v


def _vmem_capacity_bytes():
    try:
        info = pltpu.get_tpu_info()
        cap = getattr(info, "vmem_capacity_bytes", None)
        if cap:
            return int(cap)
    except Exception:
        pass
    return 128 * 1024 * 1024  # conservative default (v5e/v6e class)


def _choose_chunk(hw):
    """Lane-dense (multiple-of-128) chunk with at most 8 chunks per block."""
    if hw % 128 != 0:
        # TODO(synk): lane-dense handling for hw % 128 != 0 (pad HW to 128 or
        # map channels to the lane axis); kept as one masked chunk for correctness.
        return hw
    for n in range(8, 0, -1):
        if hw % n == 0 and (hw // n) % 128 == 0:
            return hw // n
    return hw


# ----------------------------- fused single-pass kernel -----------------------------
def _se_fused_kernel(x_ref, w1t_ref, b1_ref, w2t_ref, b2_ref, o_ref, *, chunk):
    # x_ref block: (bb, C, HW); w1t (C, hid), b1 (1, hid), w2t (hid, C), b2 (1, C)
    bb, c, hw = x_ref.shape
    n_chunks = hw // chunk
    inv_hw = 1.0 / float(hw)

    # ---- squeeze: elementwise f32 accumulation, single cross-lane reduce ----
    acc3 = x_ref[:, :, 0:chunk].astype(jnp.float32)
    for k in range(1, n_chunks):  # n_chunks <= 8 by construction (bounded unroll)
        acc3 = acc3 + x_ref[:, :, k * chunk:(k + 1) * chunk].astype(jnp.float32)
    pooled = jnp.sum(acc3, axis=-1) * inv_hw                       # (bb, C) rows

    # ---- tiny FCs + h_sigmoid (f32, lane-major rows; FLOPs negligible) ----
    h = jnp.maximum(
        jnp.dot(pooled, w1t_ref[...], preferred_element_type=jnp.float32) + b1_ref[...],
        0.0)
    z = jnp.dot(h, w2t_ref[...], preferred_element_type=jnp.float32) + b2_ref[...]
    scale = (jnp.clip(z + 3.0, 0.0, 6.0) * (1.0 / 6.0)).astype(x_ref.dtype)  # (bb, C)

    # ---- excite: broadcast once (hoisted), stream lane-dense chunks natively ----
    scale_b = jnp.broadcast_to(scale[:, :, None], (bb, c, chunk))
    for k in range(n_chunks):
        sl = slice(k * chunk, (k + 1) * chunk)
        o_ref[:, :, sl] = (x_ref[:, :, sl] * scale_b).astype(o_ref.dtype)


# ----------------------------- spatial-tiling fallback kernels -----------------------------
def _se_pool_kernel(x_ref, pooled_ref, acc_ref, *, inv_hw):
    # grid = (batch, hw_blocks); hw axis is the reduction ("arbitrary", last).
    j = pl.program_id(1)

    @pl.when(j == 0)
    def _():
        acc_ref[...] = jnp.zeros_like(acc_ref)

    acc_ref[...] += jnp.sum(x_ref[...].astype(jnp.float32), axis=-1)  # (1, C)

    @pl.when(j == pl.num_programs(1) - 1)
    def _():
        pooled_ref[...] = (acc_ref[...] * inv_hw)[None]               # (1, 1, C)


def _se_scale_mul_kernel(pooled_ref, w1t_ref, b1_ref, w2t_ref, b2_ref, x_ref, o_ref):
    # FCs are recomputed per grid step (negligible FLOPs) so both axes stay "parallel".
    pooled = pooled_ref[0]                                            # (1, C) f32
    h = jnp.maximum(
        jnp.dot(pooled, w1t_ref[...], preferred_element_type=jnp.float32) + b1_ref[...],
        0.0)
    z = jnp.dot(h, w2t_ref[...], preferred_element_type=jnp.float32) + b2_ref[...]
    scale = (jnp.clip(z + 3.0, 0.0, 6.0) * (1.0 / 6.0)).astype(x_ref.dtype)  # (1, C)
    o_ref[...] = (x_ref[...] * scale[:, :, None]).astype(o_ref.dtype)


# ----------------------------- wrapper -----------------------------
def se_layer(x, w1, b1, w2, b2, *, target_block_bytes=8 * 1024 * 1024,
             vmem_budget_bytes=None):
    """x: (b, c, h, w). w1: (hid, c), b1: (hid,), w2: (c, hid), b2: (c,)."""
    b, c, h, w = x.shape
    hw = h * w
    hid = w1.shape[0]
    itemsize = jnp.dtype(x.dtype).itemsize
    x_flat = x.reshape(b, c, hw)

    # generation-aware VMEM budget: ~96 MiB on v5e/v6e, ~48 MiB on v7x
    hw_budget = int(0.75 * _vmem_capacity_bytes())
    budget = int(min(hw_budget, vmem_budget_bytes)) if vmem_budget_bytes else hw_budget
    vmem_limit = hw_budget

    # lane-major parameters: transposed weights, row-vector biases (tiny; the
    # default double-buffering of these constant blocks costs a few KiB only)
    w1t = jnp.asarray(w1, jnp.float32).T.reshape(c, hid)
    w2t = jnp.asarray(w2, jnp.float32).T.reshape(hid, c)
    b1r = jnp.asarray(b1, jnp.float32).reshape(1, hid)
    b2r = jnp.asarray(b2, jnp.float32).reshape(1, c)

    slab = c * hw * itemsize          # bytes of one batch slab
    chunk = _choose_chunk(hw)

    def fused_working_bytes(bb_):
        blk = bb_ * slab
        tmp = bb_ * c * chunk * (4 + itemsize)   # f32 squeeze temp + scale broadcast
        return 4 * blk + tmp + (1 << 20)         # 2x in + 2x out double buffers + slack

    if fused_working_bytes(1) <= budget:
        # ---------------- fused single-pass path ----------------
        bb_cap = max(1, min(b, target_block_bytes // max(slab, 1)))
        while bb_cap > 1 and fused_working_bytes(bb_cap) > budget:
            bb_cap -= 1
        # megacore/pipelining: prefer >=8 grid steps (>=4 per TC on v7x) when B
        # allows, but never shrink blocks below ~1 MiB just to add steps.
        if b >= 8:
            bb = min(bb_cap, max(1, b // 8))
        elif b >= 2:
            bb = min(bb_cap, max(1, b // 2))
        else:
            bb = bb_cap
        min_bb_1mib = max(1, (1 << 20) // max(slab, 1))
        if bb < bb_cap and bb < min_bb_1mib:
            bb = min(bb_cap, min_bb_1mib)
        while b % bb != 0:  # uniform tiling
            bb -= 1
        grid_n = b // bb
        # prefer an even grid (megacore load balance) when possible
        if grid_n > 1 and grid_n % 2 == 1 and b % 2 == 0:
            for cand in range(bb, 0, -1):
                if b % cand == 0 and (b // cand) % 2 == 0:
                    bb = cand
                    grid_n = b // bb
                    break

        kernel = functools.partial(_se_fused_kernel, chunk=chunk)
        out = pl.pallas_call(
            kernel,
            out_shape=jax.ShapeDtypeStruct((b, c, hw), x.dtype),
            grid_spec=pltpu.PrefetchScalarGridSpec(
                num_scalar_prefetch=0,
                grid=(grid_n,),
                in_specs=[
                    pl.BlockSpec((bb, c, hw), lambda i: (i, 0, 0)),
                    pl.BlockSpec((c, hid), lambda i: (0, 0)),
                    pl.BlockSpec((1, hid), lambda i: (0, 0)),
                    pl.BlockSpec((hid, c), lambda i: (0, 0)),
                    pl.BlockSpec((1, c), lambda i: (0, 0)),
                ],
                out_specs=pl.BlockSpec((bb, c, hw), lambda i: (i, 0, 0)),
            ),
            compiler_params=pltpu.CompilerParams(
                dimension_semantics=("parallel",),
                vmem_limit_bytes=vmem_limit,
            ),
        )(x_flat, w1t, b1r, w2t, b2r)
        return out.reshape(b, c, h, w)

    # ---------------- spatial-tiling fallback (two passes over x) ----------------
    # A single batch slab does not fit the VMEM budget: tile HW. Pass 1 computes
    # the pooled (B, C) means; pass 2 re-streams x tiles and writes the scaled
    # output (~+50% HBM traffic, but every block stays VMEM-resident).
    hwt = (target_block_bytes // max(c * itemsize, 1)) // 128 * 128
    fit = ((budget - (1 << 20)) // max(4 * c * itemsize, 1)) // 128 * 128
    hwt = max(128, min(hwt, fit))
    hwt = min(hwt, pl.cdiv(hw, 128) * 128)
    hw_pad = pl.cdiv(hw, hwt) * hwt
    if hw_pad != hw:
        x_flat = jnp.pad(x_flat, ((0, 0), (0, 0), (0, hw_pad - hw)))
    n_hw = hw_pad // hwt

    pool_kernel = functools.partial(_se_pool_kernel, inv_hw=1.0 / float(hw))
    pooled = pl.pallas_call(
        pool_kernel,
        out_shape=jax.ShapeDtypeStruct((b, 1, c), jnp.float32),
        grid_spec=pltpu.PrefetchScalarGridSpec(
            num_scalar_prefetch=0,
            grid=(b, n_hw),
            in_specs=[pl.BlockSpec((1, c, hwt), lambda i, j: (i, 0, j))],
            out_specs=pl.BlockSpec((1, 1, c), lambda i, j: (i, 0, 0)),
            scratch_shapes=[pltpu.VMEM((1, c), jnp.float32)],
        ),
        compiler_params=pltpu.CompilerParams(
            dimension_semantics=("parallel", "arbitrary"),
            vmem_limit_bytes=vmem_limit,
        ),
    )(x_flat)

    out = pl.pallas_call(
        _se_scale_mul_kernel,
        out_shape=jax.ShapeDtypeStruct((b, c, hw_pad), x.dtype),
        grid_spec=pltpu.PrefetchScalarGridSpec(
            num_scalar_prefetch=0,
            grid=(b, n_hw),
            in_specs=[
                pl.BlockSpec((1, 1, c), lambda i, j: (i, 0, 0)),
                pl.BlockSpec((c, hid), lambda i, j: (0, 0)),
                pl.BlockSpec((1, hid), lambda i, j: (0, 0)),
                pl.BlockSpec((hid, c), lambda i, j: (0, 0)),
                pl.BlockSpec((1, c), lambda i, j: (0, 0)),
                pl.BlockSpec((1, c, hwt), lambda i, j: (i, 0, j)),
            ],
            out_specs=pl.BlockSpec((1, c, hwt), lambda i, j: (i, 0, j)),
        ),
        compiler_params=pltpu.CompilerParams(
            dimension_semantics=("parallel", "parallel"),
            vmem_limit_bytes=vmem_limit,
        ),
    )(pooled, w1t, b1r, w2t, b2r, x_flat)
    return out[:, :, :hw].reshape(b, c, h, w)


def se_layer_ref(x, w1, b1, w2, b2):
    # pure-JAX reference (mirrors the PyTorch forward)
    y = jnp.mean(x.astype(jnp.float32), axis=(2, 3))   # (b, c)
    y = jnp.maximum(y @ w1.T + b1, 0.0)                # (b, hid)
    y = y @ w2.T + b2                                  # (b, c)
    y = jnp.clip(y + 3.0, 0.0, 6.0) / 6.0              # h_sigmoid
    return x.astype(jnp.float32) * y[:, :, None, None]


if __name__ == "__main__":
    key = jax.random.PRNGKey(0)
    B, C, H, W = 2, 16, 16, 16
    reduction = 4
    HID = _make_divisible(C // reduction, 8)            # -> 8

    kx, k1, k2, k3, k4 = jax.random.split(key, 5)
    x = jax.random.normal(kx, (B, C, H, W), dtype=jnp.float32)
    w1 = jax.random.normal(k1, (HID, C), dtype=jnp.float32) * 0.1
    b1 = jax.random.normal(k2, (HID,), dtype=jnp.float32) * 0.1
    w2 = jax.random.normal(k3, (C, HID), dtype=jnp.float32) * 0.1
    b2 = jax.random.normal(k4, (C,), dtype=jnp.float32) * 0.1

    ref = se_layer_ref(x, w1, b1, w2, b2)

    # fused single-pass path (f32)
    out = jax.block_until_ready(se_layer(x, w1, b1, w2, b2))
    assert out.shape == (B, C, H, W)
    assert jnp.allclose(out, ref, atol=1e-5, rtol=1e-5)

    # fused path with bf16 activations (native bf16 excite multiply)
    out_bf16 = jax.block_until_ready(se_layer(x.astype(jnp.bfloat16), w1, b1, w2, b2))
    assert out_bf16.dtype == jnp.bfloat16
    assert jnp.allclose(out_bf16.astype(jnp.float32), ref, atol=5e-2, rtol=5e-2)

    # spatial-tiling fallback path (forced via a tiny VMEM budget)
    out_tiled = jax.block_until_ready(
        se_layer(x, w1, b1, w2, b2, vmem_budget_bytes=512 * 1024))
    assert out_tiled.shape == (B, C, H, W)
    assert jnp.allclose(out_tiled, ref, atol=1e-5, rtol=1e-5)

    print("KERNEL_OK")
</pallas_src>

<mosaic_0001>
module attributes {stable_mosaic.version = 11 : i64} {
  func.func @_se_fused_kernel(%arg0: i32, %arg1: memref<2x16x256xf32, #tpu.memory_space<vmem>>, %arg2: memref<16x8xf32, #tpu.memory_space<vmem>>, %arg3: memref<1x8xf32, #tpu.memory_space<vmem>>, %arg4: memref<8x16xf32, #tpu.memory_space<vmem>>, %arg5: memref<1x16xf32, #tpu.memory_space<vmem>>, %arg6: memref<2x16x256xf32, #tpu.memory_space<vmem>>) attributes {dimension_semantics = [#tpu.dimension_semantics<parallel>], iteration_bounds = array<i64: 1>, scalar_prefetch = 0 : i64, scratch_operands = 0 : i64, tpu.core_type = #tpu.core_type<tc>, window_params = [{transform_indices = @transform_0, window_bounds = array<i64: 2, 16, 256>}, {pipeline_mode = #tpu.pipeline_mode<synchronous>, transform_indices = @transform_1, window_bounds = array<i64: 16, 8>}, {pipeline_mode = #tpu.pipeline_mode<synchronous>, transform_indices = @transform_2, window_bounds = array<i64: 1, 8>}, {pipeline_mode = #tpu.pipeline_mode<synchronous>, transform_indices = @transform_3, window_bounds = array<i64: 8, 16>}, {pipeline_mode = #tpu.pipeline_mode<synchronous>, transform_indices = @transform_4, window_bounds = array<i64: 1, 16>}, {transform_indices = @transform_5, window_bounds = array<i64: 2, 16, 256>}]} {
    %c0 = arith.constant 0 : index
    %c0_0 = arith.constant 0 : index
    %c0_1 = arith.constant 0 : index
    %0 = vector.load %arg1[%c0, %c0_0, %c0_1] : memref<2x16x256xf32, #tpu.memory_space<vmem>>, vector<2x16x128xf32>
    %c0_2 = arith.constant 0 : index
    %c0_3 = arith.constant 0 : index
    %c128 = arith.constant 128 : index
    %1 = vector.load %arg1[%c0_2, %c0_3, %c128] : memref<2x16x256xf32, #tpu.memory_space<vmem>>, vector<2x16x128xf32>
    %2 = arith.addf %0, %1 : vector<2x16x128xf32>
    %cst = arith.constant dense<0.000000e+00> : vector<2x16xf32>
    %3 = vector.multi_reduction <add>, %2, %cst [2] : vector<2x16x128xf32> to vector<2x16xf32>
    %cst_4 = arith.constant 3.906250e-03 : f32
    %4 = vector.broadcast %cst_4 : f32 to vector<2x16xf32>
    %5 = arith.mulf %3, %4 : vector<2x16xf32>
    %c0_5 = arith.constant 0 : index
    %c0_6 = arith.constant 0 : index
    %6 = vector.load %arg2[%c0_5, %c0_6] : memref<16x8xf32, #tpu.memory_space<vmem>>, vector<16x8xf32>
    %cst_7 = arith.constant dense<0.000000e+00> : vector<2x8xf32>
    %7 = tpu.matmul %5, %6, %cst_7 {dimension_numbers = #tpu.dot_dimension_numbers<[1], [0], [0], [1], [0, 0, 1, 1], [], []>} : vector<2x16xf32>, vector<16x8xf32>, vector<2x8xf32> -> vector<2x8xf32>
    %c0_8 = arith.constant 0 : index
    %c0_9 = arith.constant 0 : index
    %8 = vector.load %arg3[%c0_8, %c0_9] : memref<1x8xf32, #tpu.memory_space<vmem>>, vector<1x8xf32>
    %9 = vector.broadcast %8 : vector<1x8xf32> to vector<2x8xf32>
    %10 = arith.addf %7, %9 : vector<2x8xf32>
    %cst_10 = arith.constant 0.000000e+00 : f32
    %11 = vector.broadcast %cst_10 : f32 to vector<2x8xf32>
    %12 = arith.maximumf %10, %11 : vector<2x8xf32>
    %c0_11 = arith.constant 0 : index
    %c0_12 = arith.constant 0 : index
    %13 = vector.load %arg4[%c0_11, %c0_12] : memref<8x16xf32, #tpu.memory_space<vmem>>, vector<8x16xf32>
    %cst_13 = arith.constant dense<0.000000e+00> : vector<2x16xf32>
    %14 = tpu.matmul %12, %13, %cst_13 {dimension_numbers = #tpu.dot_dimension_numbers<[1], [0], [0], [1], [0, 0, 1, 1], [], []>} : vector<2x8xf32>, vector<8x16xf32>, vector<2x16xf32> -> vector<2x16xf32>
    %c0_14 = arith.constant 0 : index
    %c0_15 = arith.constant 0 : index
    %15 = vector.load %arg5[%c0_14, %c0_15] : memref<1x16xf32, #tpu.memory_space<vmem>>, vector<1x16xf32>
    %16 = vector.broadcast %15 : vector<1x16xf32> to vector<2x16xf32>
    %17 = arith.addf %14, %16 : vector<2x16xf32>
    %cst_16 = arith.constant 3.000000e+00 : f32
    %18 = vector.broadcast %cst_16 : f32 to vector<2x16xf32>
    %19 = arith.addf %17, %18 : vector<2x16xf32>
    %cst_17 = arith.constant 0.000000e+00 : f32
    %cst_18 = arith.constant 6.000000e+00 : f32
    %20 = vector.broadcast %cst_17 : f32 to vector<2x16xf32>
    %21 = arith.maximumf %20, %19 : vector<2x16xf32>
    %22 = vector.broadcast %cst_18 : f32 to vector<2x16xf32>
    %23 = arith.minimumf %22, %21 : vector<2x16xf32>
    %cst_19 = arith.constant 0.166666672 : f32
    %24 = vector.broadcast %cst_19 : f32 to vector<2x16xf32>
    %25 = arith.mulf %23, %24 : vector<2x16xf32>
    %26 = vector.shape_cast %25 : vector<2x16xf32> to vector<2x16x1xf32>
    %27 = vector.shape_cast %26 : vector<2x16x1xf32> to vector<2x16x1xf32>
    %28 = vector.broadcast %27 : vector<2x16x1xf32> to vector<2x16x128xf32>
    %c0_20 = arith.constant 0 : index
    %c0_21 = arith.constant 0 : index
    %c0_22 = arith.constant 0 : index
    %29 = vector.load %arg1[%c0_20, %c0_21, %c0_22] : memref<2x16x256xf32, #tpu.memory_space<vmem>>, vector<2x16x128xf32>
    %30 = arith.mulf %29, %28 : vector<2x16x128xf32>
    %c0_23 = arith.constant 0 : index
    %c0_24 = arith.constant 0 : index
    %c0_25 = arith.constant 0 : index
    %31 = vector.load %arg6[%c0_23, %c0_24, %c0_25] : memref<2x16x256xf32, #tpu.memory_space<vmem>>, vector<2x16x128xf32>
    tpu.vector_store %arg6[%c0_23, %c0_24, %c0_25], %30 {strides = array<i32>} : memref<2x16x256xf32, #tpu.memory_space<vmem>>, vector<2x16x128xf32>,
    %c0_26 = arith.constant 0 : index
    %c0_27 = arith.constant 0 : index
    %c128_28 = arith.constant 128 : index
    %32 = vector.load %arg1[%c0_26, %c0_27, %c128_28] : memref<2x16x256xf32, #tpu.memory_space<vmem>>, vector<2x16x128xf32>
    %33 = arith.mulf %32, %28 : vector<2x16x128xf32>
    %c0_29 = arith.constant 0 : index
    %c0_30 = arith.constant 0 : index
    %c128_31 = arith.constant 128 : index
    %34 = vector.load %arg6[%c0_29, %c0_30, %c128_31] : memref<2x16x256xf32, #tpu.memory_space<vmem>>, vector<2x16x128xf32>
    tpu.vector_store %arg6[%c0_29, %c0_30, %c128_31], %33 {strides = array<i32>} : memref<2x16x256xf32, #tpu.memory_space<vmem>>, vector<2x16x128xf32>,
    return
  }
  func.func @transform_0(%arg0: i32) -> (i32, i32, i32) {
    %c0_i32 = arith.constant 0 : i32
    %c0_i32_0 = arith.constant 0 : i32
    %c0_i32_1 = arith.constant 0 : i32
    return %arg0, %c0_i32, %c0_i32_0 : i32, i32, i32
  }
  func.func @transform_1(%arg0: i32) -> (i32, i32) {
    %c0_i32 = arith.constant 0 : i32
    %c0_i32_0 = arith.constant 0 : i32
    %c0_i32_1 = arith.constant 0 : i32
    return %c0_i32, %c0_i32_0 : i32, i32
  }
  func.func @transform_2(%arg0: i32) -> (i32, i32) {
    %c0_i32 = arith.constant 0 : i32
    %c0_i32_0 = arith.constant 0 : i32
    %c0_i32_1 = arith.constant 0 : i32
    return %c0_i32, %c0_i32_0 : i32, i32
  }
  func.func @transform_3(%arg0: i32) -> (i32, i32) {
    %c0_i32 = arith.constant 0 : i32
    %c0_i32_0 = arith.constant 0 : i32
    %c0_i32_1 = arith.constant 0 : i32
    return %c0_i32, %c0_i32_0 : i32, i32
  }
  func.func @transform_4(%arg0: i32) -> (i32, i32) {
    %c0_i32 = arith.constant 0 : i32
    %c0_i32_0 = arith.constant 0 : i32
    %c0_i32_1 = arith.constant 0 : i32
    return %c0_i32, %c0_i32_0 : i32, i32
  }
  func.func @transform_5(%arg0: i32) -> (i32, i32, i32) {
    %c0_i32 = arith.constant 0 : i32
    %c0_i32_0 = arith.constant 0 : i32
    %c0_i32_1 = arith.constant 0 : i32
    return %arg0, %c0_i32, %c0_i32_0 : i32, i32, i32
  }
}

</mosaic_0001>

<bundles_post_ra>
// kernel: tpu_custom_call.1
= control target key start
LH: loop header
LB: loop body
LE: loop exit
PB: predicated region body
PF: predicated region fallthrough
CT: control target
= control target key end

     0   :  { %10 = vsyncpa [#allocation3], 0  ;;  %s695_s0 = inlined_call_operand.hbm [shape: f32[2,16,256], index: 0, kind: input, shape index: {}]   ;;  %s696_s1 = inlined_call_operand.hbm [shape: f32[16,8], index: 1, kind: input, shape index: {}]   ;;  %s697_s2 = inlined_call_operand.hbm [shape: f32[1,8], index: 2, kind: input, shape index: {}]   ;;  %s698_s3 = inlined_call_operand.hbm [shape: f32[8,16], index: 3, kind: input, shape index: {}]   ;;  %s699_s4 = inlined_call_operand.hbm [shape: f32[1,16], index: 4, kind: input, shape index: {}]   ;;  %s700_s5 = inlined_call_operand.hbm [shape: f32[2,16,256], index: 5, kind: output, shape index: {}]  }
   0x1   :  { %11 = vsyncpa [#allocation6], 0 }
   0x2   :  { %12 = vsyncpa [#allocation9], 0 }
   0x3   :  { %13 = vsyncpa [#allocation4], 0  ;;  %s542_s18 = smov [#allocation5]   ;;  %s402_s22 = scalar_lea.hbm %s696_s1, 256 }
   0x4   :  { %s31_s19 = sshll.u32 %s542_s18, 4  ;;  %p403_p0 = scmp.ne.s32.totalorder %s696_s1, %s402_s22  ;;  %s32_s19 = int_to_ptr.vmem [resolvable:$true] %s31_s19 }
   0x5   :  { %p406_p1 = scmp.lt.u32.totalorder %s402_s22, %s696_s1 }
   0x7   :  { %p408_p2 = pnand %p406_p1, %p403_p0 }
   0x9   :  { %411 = shalt.err (!%p408_p2)
}
   0xa   :  { %s412_s27 = scalar_lea.vmem %s32_s19, 256  ;;  %p417_p4 = scmp.lt.s32.totalorder %s32_s19, %s32_s19 }
   0xb   :  { %p413_p3 = scmp.ne.s32.totalorder %s32_s19, %s412_s27  ;;  %p418_p5 = scmp.lt.s32.totalorder %s412_s27, %s412_s27 }
   0xd   :  { %p419_p6 = por %p418_p5, %p417_p4 }
   0xf   :  { %p420_p7 = pnand %p419_p6, %p413_p3 }
  0x11   :  { %423 = shalt.err (!%p420_p7)
}
  0x12   :  { %s543_s28 = smov 128   ;;  %s544_s29 = smov 8  }
  0x13   :  { %37 = dma.hbm_to_vmem [thread:$0]  %s696_s1, 256, %s32_s19, [#allocation6], %s543_s28, %s543_s28, %s544_s29  }
  0x14   :  { %s545_s7 = smov [#allocation8]   ;;  %s546_s9 = smov [#allocation2]  }
  0x15   :  { %s54_s8 = sshll.u32 %s545_s7, 4  ;;  %s19_s10 = sshll.u32 %s546_s9, 4  ;;  %s55_s8 = int_to_ptr.vmem [resolvable:$true] %s54_s8  ;;  %s20_s10 = int_to_ptr.vmem [resolvable:$true] %s19_s10 }
  0x16   :  { %s424_s13 = scalar_lea.hbm %s698_s3, 128 }
  0x17   :  { %p425_p8 = scmp.ne.s32.totalorder %s698_s3, %s424_s13  ;;  %p428_p9 = scmp.lt.u32.totalorder %s424_s13, %s698_s3 }
  0x19   :  { %p430_p10 = pnand %p428_p9, %p425_p8 }
  0x1b   :  { %433 = shalt.err (!%p430_p10)
}
  0x1c   :  { %s434_s1 = scalar_lea.vmem %s55_s8, 128  ;;  %p439_p12 = scmp.lt.s32.totalorder %s55_s8, %s55_s8 }
  0x1d   :  { %p435_p11 = scmp.ne.s32.totalorder %s55_s8, %s434_s1  ;;  %p440_p13 = scmp.lt.s32.totalorder %s434_s1, %s434_s1 }
  0x1f   :  { %p441_p0 = por %p440_p13, %p439_p12 }
  0x21   :  { %p442_p1 = pnand %p441_p0, %p435_p11 }
  0x23   :  { %445 = shalt.err (!%p442_p1)
}
  0x24   :  { %57 = dma.hbm_to_vmem [thread:$0]  %s698_s3, 128, %s55_s8, [#allocation9]  }
  0x25   :  { %s446_s22 = scalar_lea.hbm %s695_s0, 1024 }
  0x26   :  { %p447_p2 = scmp.ne.s32.totalorder %s695_s0, %s446_s22  ;;  %p450_p3 = scmp.lt.u32.totalorder %s446_s22, %s695_s0 }
  0x28   :  { %p452_p4 = pnand %p450_p3, %p447_p2 }
  0x2a   :  { %455 = shalt.err (!%p452_p4)
}
  0x2b   :  { %s456_s27 = scalar_lea.vmem %s20_s10, 1024  ;;  %p461_p6 = scmp.lt.s32.totalorder %s20_s10, %s20_s10 }
  0x2c   :  { %p457_p5 = scmp.ne.s32.totalorder %s20_s10, %s456_s27  ;;  %p462_p7 = scmp.lt.s32.totalorder %s456_s27, %s456_s27 }
  0x2e   :  { %p463_p8 = por %p462_p7, %p461_p6 }
  0x30   :  { %p464_p9 = pnand %p463_p8, %p457_p5 }
  0x32   :  { %467 = shalt.err (!%p464_p9)
}
  0x33   :  { %s547_s3 = smov 256   ;;  %s548_s28 = smov 16  }
  0x34   :  { %25 = dma.hbm_to_vmem [thread:$0]  %s695_s0, 1024, %s20_s10, [#allocation3], %s547_s3, %s547_s3, %s548_s28  }
  0x35   :  { %s549_s6 = smov [#allocation7]   ;;  %s550_s8 = smov [#allocation10]  }
  0x36   :  { %s44_s7 = sshll.u32 %s549_s6, 4  ;;  %s64_s9 = sshll.u32 %s550_s8, 4  ;;  %s45_s7 = int_to_ptr.vmem [resolvable:$true] %s44_s7  ;;  %s65_s9 = int_to_ptr.vmem [resolvable:$true] %s64_s9 }
  0x37   :  { %s468_s13 = scalar_lea.hbm %s697_s2, 16 }
  0x38   :  { %p469_p10 = scmp.ne.s32.totalorder %s697_s2, %s468_s13  ;;  %p472_p11 = scmp.lt.u32.totalorder %s468_s13, %s697_s2 }
  0x3a   :  { %p474_p12 = pnand %p472_p11, %p469_p10 }
  0x3c   :  { %477 = shalt.err (!%p474_p12)
}
  0x3d   :  { %s478_s0 = scalar_lea.vmem %s45_s7, 16  ;;  %s482_s10 = scalar_lea.vmem %s45_s7, 32 }
  0x3e   :  { %p479_p13 = scmp.ne.s32.totalorder %s45_s7, %s478_s0  ;;  %p483_p0 = scmp.lt.s32.totalorder %s45_s7, %s45_s7 }
  0x3f   :  { %p484_p1 = scmp.lt.s32.totalorder %s482_s10, %s478_s0 }
  0x41   :  { %p485_p2 = por %p484_p1, %p483_p0 }
  0x43   :  { %p486_p3 = pnand %p485_p2, %p479_p13 }
  0x45   :  { %489 = shalt.err (!%p486_p3)
}
  0x46   :  { %47 = dma.hbm_to_vmem [thread:$0]  %s697_s2, 16, %s45_s7, [#allocation6]  }
  0x47   :  { %s490_s21 = scalar_lea.hbm %s699_s4, 16 }
  0x48   :  { %p491_p4 = scmp.ne.s32.totalorder %s699_s4, %s490_s21  ;;  %p494_p5 = scmp.lt.u32.totalorder %s490_s21, %s699_s4 }
  0x4a   :  { %p496_p6 = pnand %p494_p5, %p491_p4 }
  0x4c   :  { %499 = shalt.err (!%p496_p6)
}
  0x4d   :  { %s500_s26 = scalar_lea.vmem %s65_s9, 16  ;;  %s504_s27 = scalar_lea.vmem %s65_s9, 32 }
  0x4e   :  { %p501_p7 = scmp.ne.s32.totalorder %s65_s9, %s500_s26  ;;  %p505_p8 = scmp.lt.s32.totalorder %s65_s9, %s65_s9 }
  0x4f   :  { %p506_p9 = scmp.lt.s32.totalorder %s504_s27, %s500_s26 }
  0x51   :  { %p507_p10 = por %p506_p9, %p505_p8 }
  0x53   :  { %p508_p11 = pnand %p507_p10, %p501_p7 }
  0x55   :  { %511 = shalt.err (!%p508_p11)
}
  0x56   :  { %67 = dma.hbm_to_vmem [thread:$0]  %s699_s4, 16, %s65_s9, [#allocation9]  }
  0x57   :  { %534 = dma.done.wait [#allocation3], 1024  }
  0x58   :  { %535 = vsyncadd [#allocation3], 4294966272 }
  0x59   :  { %536 = dma.done.wait [#allocation6], 272  }
  0x5a   :  { %537 = vsyncadd [#allocation6], 4294967024 }
  0x5b   :  { %538 = dma.done.wait [#allocation9], 144  }
  0x5c   :  { %539 = vsyncadd [#allocation9], 4294967152  ;;  %v648_v0 = vld [vmem:[#allocation2 + $0x20] sm:$0xff]  ;;  %v650_v1 = vld [vmem:[#allocation2 + $0x28] sm:$0xff]  ;;  %v551_v15 = vmov 0.0|0.0   ;;  %vm552_vm0 = vmmov 0   ;;  %v120_v17 = vlaneseq }
  0x5d   :  { %v652_v2 = vld [vmem:[#allocation2] sm:$0xff]  ;;  %v93_v3 = vadd.f32 %v650_v1, %v648_v0  ;;  %v656_v4 = vld [vmem:[#allocation2 + $0x8] sm:$0xff]  ;;  %v658_v5 = vld [vmem:[#allocation2 + $0x30] sm:$0xff]  ;;  %386 = vmatprep.subr.bf16.mxu0 %v551_v15  ;;  %v553_v16 = vmov 0.0   ;;  %vm131_vm1 = vcmask 130112   ;;  %vm142_vm2 = vcmask 1041409  }
  0x5e   :  { %v660_v6 = vld [vmem:[#allocation2 + $0x38] sm:$0xff]  ;;  %v91_v7 = vadd.f32 %v656_v4, %v652_v2  ;;  %v664_v8 = vld [vmem:[#allocation2 + $0x10] sm:$0xff]  ;;  %v107_v12 = vld [vmem:[#allocation5] sm:$0xff]  ;;  %378 = vmatprep.mubr.msk.f32.mxu0 %vm552_vm0, %v553_v16  ;;  %381 = vmatprep.subr.mxu1 %v553_v16  ;;  %v121_v18 = vand.u32 127, %v120_v17  ;;  %v123_v19 = vshrl.u32 %v120_v17, 7  ;;  %vm144_vm3 = vcmask 130048  }
  0x5f   :  { %v666_v9 = vld [vmem:[#allocation2 + $0x18] sm:$0xff]  ;;  %99 = vadd.xlane.f32.xlu1 %v93_v3  ;;  %v94_v10 = vadd.f32 %v660_v6, %v658_v5  ;;  %v108_v13 = vld [vmem:[#allocation5 + $0x8] sm:$0xff]  ;;  %383 = vmatprep.mubr.msk.f32.mxu1 %vm552_vm0, %v553_v16  ;;  %v365_v39 = vld [vmem:[#allocation7] ss:$0 sm:$0xff]  ;;  %vm226_vm4 = vcmask 64512   ;;  %s554_s4 = smov [#allocation11]  }
  0x60   :  { %95 = vadd.xlane.f32.xlu0 %v91_v7  ;;  %v92_v11 = vadd.f32 %v666_v9, %v664_v8  ;;  %v387_v14 = vpack.c.bf16 %v108_v13, %v107_v12  ;;  %v126_v20 = vadd.s32 4294967288, %v121_v18  ;;  %v124_v23 = vsub.s32 %v121_v18, %v123_v19  ;;  %v218_v38 = vld [vmem:[#allocation8] sm:$0xff]  ;;  %v367_v44 = vld [vmem:[#allocation10] ss:$0 sm:$0xff]  ;;  %s351_s30 = sshll.u32 %s554_s4, 4  ;;  %s352_s30 = int_to_ptr.vmem [resolvable:$true] %s351_s30 }
  0x61   :  { %382 = vmatpush3.msra.mxu1 %v218_v38  ;;  %v306_v51 = vsub.s32 0, %v123_v19  ;;  %v317_v54 = vsub.s32 1, %v123_v19  ;;  %s512_s6 = scalar_lea.vmem %s352_s30, 1024  ;;  %p517_p13 = scmp.lt.s32.totalorder %s352_s30, %s352_s30 }
  0x62   :  { %388 = vmatpush3.bf16.msra.mxu0 %v387_v14  ;;  %v129_v25 = vsub.s32 %v126_v20, %v123_v19  ;;  %p513_p12 = scmp.ne.s32.totalorder %s352_s30, %s512_s6  ;;  %p518_p0 = scmp.lt.s32.totalorder %s512_s6, %s512_s6 }
  0x63   :  { %101 = vadd.xlane.f32.xlu1 %v94_v10 }
  0x64   :  { %97 = vadd.xlane.f32.xlu0 %v92_v11  ;;  %p519_p1 = por %p518_p0, %p517_p13 }
  0x66   :  { %p520_p2 = pnand %p519_p1, %p513_p12 }
  0xec   :  { %v100_v21 = vpop.xlane.xlu1 %99 }
  0xed   :  { %v96_v22 = vpop.xlane.xlu0 %95  ;;  %v105_v24 = vmul.f32 0.00390625, %v100_v21 }
  0xee   :  { %v103_v26 = vmul.f32 0.00390625, %v96_v22 }
  0xef   :  { %v136_v31 = vrot.slane %v105_v24, %v124_v23 }
  0xf0   :  { %v102_v27 = vpop.xlane.xlu1 %101  ;;  %v125_v33 = vrot.slane %v103_v26, %v124_v23 }
  0xf1   :  { %v106_v28 = vmul.f32 0.00390625, %v102_v27  ;;  %v98_v29 = vpop.xlane.xlu0 %97 }
  0xf2   :  { %v104_v30 = vmul.f32 0.00390625, %v98_v29 }
  0xf3   :  { %v140_v32 = vrot.slane %v106_v28, %v129_v25 }
  0xf4   :  { %v130_v34 = vrot.slane %v104_v30, %v129_v25 }
  0xf5   :  { %v141_v35 = vsel %vm131_vm1, %v140_v32, %v136_v31 }
  0xf6   :  { %v132_v36 = vsel %vm131_vm1, %v130_v34, %v125_v33 }
  0xf7   :  { %v143_v37 = vsel %vm142_vm2, %v141_v35, %v132_v36 }
  0xf8   :  { %379 = vmatmul.mubr.msk.f32.vlgmr.msra.gmra.mrb[0].mxu0 %vm144_vm3, %v143_v37 }
 0x1cb   :  { %v213_v40 = vpop.f32.mrb[0].mxu0 }
 0x1cc   :  { %v214_v41 = vadd.f32 %v365_v39, %v213_v40  ;;  %v380_v42 = vpop.f32.mrb[1].mxu0 }
 0x1ce   :  { %v217_v43 = vmax.f32 %v214_v41, 0.0 }
 0x1d0   :  { %384 = vmatmul.mubr.msk.f32.vlgmr.msra.gmra.mrb[0].mxu1 %vm226_vm4, %v217_v43 }
 0x2a3   :  { %v296_v45 = vpop.f32.mrb[0].mxu1 }
 0x2a4   :  { %v297_v46 = vadd.f32 %v367_v44, %v296_v45  ;;  %v385_v47 = vpop.f32.mrb[1].mxu1 }
 0x2a6   :  { %v300_v48 = vadd.f32 3.0, %v297_v46 }
 0x2a8   :  { %v301_v49 = vmax.f32 %v300_v48, 0.0 }
 0x2aa   :  { %v302_v50 = vmin.f32 %v301_v49, 6.0 }
 0x2ac   :  { %v303_v52 = vmul.f32 0.16666667, %v302_v50 }
 0x2ae   :  { %v307_v53 = vrot.slane %v303_v52, %v306_v51  ;;  %v318_v55 = vrot.slane %v303_v52, %v317_v54 }
 0x2b0   :  { %313 = vbcast.lane.b32.xlu1 %v307_v53, 264  ;;  %309 = vbcast.lane.b32.xlu0 %v307_v53, 256 }
 0x2b4   :  { %320 = vbcast.lane.b32.xlu1 %v318_v55, 256 }
 0x2b8   :  { %324 = vbcast.lane.b32.xlu1 %v318_v55, 264 }
 0x322   :  { %v314_v56 = vpop.permute.xlu1 %313  ;;  %v310_v57 = vpop.permute.xlu0 %309 }
 0x323   :  { %v327_v58 = vmul.f32 %v314_v56, %v664_v8  ;;  %v339_v59 = vmul.f32 %v314_v56, %v666_v9  ;;  %v326_v60 = vmul.f32 %v310_v57, %v652_v2  ;;  %v338_v61 = vmul.f32 %v310_v57, %v656_v4 }
 0x325   :  { %331 = vst [vmem:[#allocation11 + $0x10] sm:$0xff] %v327_v58  ;;  %343 = vst [vmem:[#allocation11 + $0x18] sm:$0xff] %v339_v59 }
 0x326   :  { %330 = vst [vmem:[#allocation11] sm:$0xff] %v326_v60  ;;  %342 = vst [vmem:[#allocation11 + $0x8] sm:$0xff] %v338_v61  ;;  %v321_v62 = vpop.permute.xlu1 %320 }
 0x327   :  { %v328_v63 = vmul.f32 %v321_v62, %v648_v0  ;;  %v340_v3 = vmul.f32 %v321_v62, %v650_v1 }
 0x329   :  { %332 = vst [vmem:[#allocation11 + $0x20] sm:$0xff] %v328_v63  ;;  %344 = vst [vmem:[#allocation11 + $0x28] sm:$0xff] %v340_v3 }
 0x32a   :  { %v325_v7 = vpop.permute.xlu1 %324 }
 0x32b   :  { %v329_v8 = vmul.f32 %v325_v7, %v658_v5  ;;  %v341_v2 = vmul.f32 %v325_v7, %v660_v6 }
 0x32d   :  { %333 = vst [vmem:[#allocation11 + $0x30] sm:$0xff] %v329_v8  ;;  %345 = vst [vmem:[#allocation11 + $0x38] sm:$0xff] %v341_v2 }
 0x32e   :  { %523 = shalt.err (!%p520_p2)
}
 0x32f   :  { %s524_s9 = scalar_lea.hbm %s700_s5, 1024 }
 0x330   :  { %p525_p3 = scmp.ne.s32.totalorder %s700_s5, %s524_s9  ;;  %p528_p4 = scmp.lt.u32.totalorder %s524_s9, %s700_s5 }
 0x332   :  { %p530_p5 = pnand %p528_p4, %p525_p3 }
 0x334   :  { %533 = shalt.err (!%p530_p5)
}
 0x335   :  { %357 = dma.vmem_to_hbm [thread:$0]  %s352_s30, 1024, %s700_s5, [#allocation4], %s547_s3, %s547_s3, %s548_s28  }
 0x336   :  { %540 = dma.done.wait [#allocation4], 1024  }
 0x337   :  { %541 = vsyncadd [#allocation4], 4294966272 }
 0x338   :  { %361 = vsyncpa [#allocation3], 1 }
 0x339   :  { %362 = vsyncpa [#allocation6], 1 }
 0x33a   :  { %363 = vsyncpa [#allocation9], 1 }
 0x33b   :  { %364 = vsyncpa [#allocation4], 1 }

</bundles_post_ra>
